<compile_context>
chip_gen: v5e
topology: v5e:2x2
jax: 0.10.0
libtpu: 0.0.40
codegen_flags: <defaults>
</compile_context>

<pallas_src>
import functools

import jax
import jax.numpy as jnp
from jax.experimental import pallas as pl
from jax.experimental.pallas import tpu as pltpu

_LANES = 128
_SUBLANES = 8
_VMEM_WORK_BUDGET = 32 * 1024 * 1024   # sized against the smallest generation (v7x)
_VMEM_LIMIT_BYTES = 48 * 1024 * 1024   # explicit scoped-VMEM limit with headroom
_MAX_TILE_N = 1024                     # diminishing returns beyond ~1024 rows


def _round_up(x, m):
    return ((x + m - 1) // m) * m


def _fc_block_kernel(x_ref, w_ref, p_ref, o_ref, *, add_residual, matmul_dtype):
    # x_ref: [TILE_N, C_in_p]   (f32, batch tile)
    # w_ref: [C_in_p, C_out_p]  (matmul_dtype, VMEM-resident across grid steps)
    # p_ref: [8, C_out_p]       row 0 = bias, row 1 = bn scale, row 2 = bn shift (f32)
    # o_ref: [TILE_N, C_out_p]
    x = x_ref[...]
    # Linear on the MXU (f32 accumulate); inputs optionally cast to bf16/fp8.
    y = jnp.dot(x.astype(matmul_dtype), w_ref[...],
                preferred_element_type=jnp.float32)
    # bias + ReLU (dropout is identity in eval mode)
    y = jnp.maximum(y + p_ref[0:1, :], 0.0)
    # BatchNorm1d (eval) folded to affine
    y = y * p_ref[1:2, :] + p_ref[2:3, :]
    if add_residual:
        y = y + x.astype(jnp.float32)
    o_ref[...] = y.astype(o_ref.dtype)


def full_connected_block(x, w_t, b, scale, shift, *, use_residual=True,
                         matmul_dtype=jnp.float32):
    """Fused FullConnectedBlock forward (eval mode).

    x:     [N, C_in]      float32
    w_t:   [C_in, C_out]  (PyTorch weight transposed)
    b:     [C_out]
    scale: [C_out]        gamma / sqrt(running_var + eps)
    shift: [C_out]        beta - running_mean * scale
    matmul_dtype: dtype fed to the MXU (f32, or bf16 on v6e/v7x).
    """
    n, c_in = x.shape
    c_in_w, c_out = w_t.shape
    assert c_in_w == c_in
    add_residual = bool(use_residual and c_in == c_out)

    # Lane-dense padding of the feature axes (multiples of 128).
    c_in_p = _round_up(c_in, _LANES)
    c_out_p = _round_up(c_out, _LANES)

    # Pick the batch tile: largest multiple of 8 fitting the VMEM working budget,
    # accounting for double-buffered x/out tiles and the resident weight/params.
    w_itemsize = jnp.dtype(matmul_dtype).itemsize
    resident = 2 * (c_in_p * c_out_p * w_itemsize + _SUBLANES * c_out_p * 4)
    per_row = 2 * (c_in_p + c_out_p) * 4
    tile_n = (_VMEM_WORK_BUDGET - resident) // per_row
    tile_n = max(_SUBLANES, min(_MAX_TILE_N, (tile_n // _SUBLANES) * _SUBLANES))
    tile_n = min(tile_n, _round_up(n, _SUBLANES))
    n_p = _round_up(n, tile_n)
    num_tiles = n_p // tile_n

    # Pad inputs (zeros in padded rows/cols do not perturb the valid region).
    x_p = jnp.zeros((n_p, c_in_p), x.dtype).at[:n, :c_in].set(x)
    w_p = jnp.zeros((c_in_p, c_out_p), matmul_dtype).at[:c_in, :c_out].set(
        w_t.astype(matmul_dtype))
    # Pack bias / scale / shift into one parameter tile (single DMA, 8 sublanes).
    params = jnp.zeros((_SUBLANES, c_out_p), jnp.float32)
    params = params.at[0, :c_out].set(b.astype(jnp.float32))
    params = params.at[1, :c_out].set(scale.astype(jnp.float32))
    params = params.at[2, :c_out].set(shift.astype(jnp.float32))

    kernel = functools.partial(_fc_block_kernel,
                               add_residual=add_residual,
                               matmul_dtype=matmul_dtype)

    flops = 2 * n_p * c_in_p * c_out_p
    bytes_accessed = (x_p.size * x_p.dtype.itemsize
                      + w_p.size * w_p.dtype.itemsize
                      + params.size * 4
                      + n_p * c_out_p * x.dtype.itemsize)

    out_p = pl.pallas_call(
        kernel,
        out_shape=jax.ShapeDtypeStruct((n_p, c_out_p), x.dtype),
        grid=(num_tiles,),
        in_specs=[
            pl.BlockSpec((tile_n, c_in_p), lambda i: (i, 0)),     # batch tile
            pl.BlockSpec((c_in_p, c_out_p), lambda i: (0, 0)),    # resident weight
            pl.BlockSpec((_SUBLANES, c_out_p), lambda i: (0, 0)),  # resident params
        ],
        out_specs=pl.BlockSpec((tile_n, c_out_p), lambda i: (i, 0)),
        compiler_params=pltpu.CompilerParams(
            dimension_semantics=("parallel",),
            vmem_limit_bytes=_VMEM_LIMIT_BYTES,
        ),
        cost_estimate=pl.CostEstimate(
            flops=flops, transcendentals=0, bytes_accessed=bytes_accessed),
    )(x_p, w_p, params)

    return out_p[:n, :c_out]


def reference_forward(x, w_t, b, scale, shift, *, use_residual=True):
    """Pure-JAX reference matching PyTorch eval-mode forward."""
    y = jnp.maximum(x @ w_t + b, 0.0)
    y = y * scale + shift
    if use_residual and x.shape[1] == w_t.shape[1]:
        y = y + x
    return y


if __name__ == "__main__":
    # Module config (in_channels == out_channels so the residual path is active)
    in_channels = 32
    out_channels = 32
    batch = 8
    dropout_rate = 0.3  # identity in eval mode
    eps = 1e-5

    key = jax.random.PRNGKey(0)
    kx, kw, kb, kg, kbe, krm, krv = jax.random.split(key, 7)

    # Deterministic synthetic parameters (shapes from nn.Linear / nn.BatchNorm1d).
    bound = 1.0 / jnp.sqrt(in_channels)
    weight = jax.random.uniform(kw, (out_channels, in_channels),
                                minval=-bound, maxval=bound, dtype=jnp.float32)
    bias = jax.random.uniform(kb, (out_channels,),
                              minval=-bound, maxval=bound, dtype=jnp.float32)
    gamma = 1.0 + 0.1 * jax.random.normal(kg, (out_channels,), dtype=jnp.float32)
    beta = 0.1 * jax.random.normal(kbe, (out_channels,), dtype=jnp.float32)
    running_mean = 0.1 * jax.random.normal(krm, (out_channels,), dtype=jnp.float32)
    running_var = 1.0 + 0.05 * jax.random.uniform(krv, (out_channels,), dtype=jnp.float32)

    # Fold BatchNorm1d eval-mode stats into affine scale/shift.
    scale = gamma / jnp.sqrt(running_var + eps)
    shift = beta - running_mean * scale

    x = jax.random.normal(kx, (batch, in_channels), dtype=jnp.float32)
    w_t = weight.T  # [C_in, C_out]

    ref = reference_forward(x, w_t, bias, scale, shift, use_residual=True)

    # Full-precision path (default): tight tolerance vs. reference.
    out = full_connected_block(x, w_t, bias, scale, shift, use_residual=True)
    out = jax.block_until_ready(out)
    assert out.shape == (batch, out_channels)
    assert jnp.allclose(out, ref, atol=1e-5, rtol=1e-5), "f32 mismatch vs reference"

    # bf16-MXU path (recommended on v6e/v7x): f32 accumulate + f32 epilogue,
    # looser tolerance due to bf16 input rounding.
    out_bf16 = full_connected_block(x, w_t, bias, scale, shift,
                                    use_residual=True, matmul_dtype=jnp.bfloat16)
    out_bf16 = jax.block_until_ready(out_bf16)
    assert jnp.allclose(out_bf16, ref, atol=5e-2, rtol=5e-2), "bf16 mismatch vs reference"

    print("KERNEL_OK")
</pallas_src>

<mosaic_0001>
module attributes {stable_mosaic.version = 11 : i64} {
  func.func @_fc_block_kernel(%arg0: i32, %arg1: memref<8x128xf32, #tpu.memory_space<vmem>>, %arg2: memref<128x128xf32, #tpu.memory_space<vmem>>, %arg3: memref<8x128xf32, #tpu.memory_space<vmem>>, %arg4: memref<8x128xf32, #tpu.memory_space<vmem>>) attributes {dimension_semantics = [#tpu.dimension_semantics<parallel>], iteration_bounds = array<i64: 1>, scalar_prefetch = 0 : i64, scratch_operands = 0 : i64, tpu.core_type = #tpu.core_type<tc>, window_params = [{transform_indices = @transform_0, window_bounds = array<i64: 8, 128>}, {pipeline_mode = #tpu.pipeline_mode<synchronous>, transform_indices = @transform_1, window_bounds = array<i64: 128, 128>}, {pipeline_mode = #tpu.pipeline_mode<synchronous>, transform_indices = @transform_2, window_bounds = array<i64: 8, 128>}, {transform_indices = @transform_3, window_bounds = array<i64: 8, 128>}]} {
    %c0 = arith.constant 0 : index
    %c0_0 = arith.constant 0 : index
    %0 = vector.load %arg1[%c0, %c0_0] : memref<8x128xf32, #tpu.memory_space<vmem>>, vector<8x128xf32>
    %c0_1 = arith.constant 0 : index
    %c0_2 = arith.constant 0 : index
    %1 = vector.load %arg2[%c0_1, %c0_2] : memref<128x128xf32, #tpu.memory_space<vmem>>, vector<128x128xf32>
    %cst = arith.constant dense<0.000000e+00> : vector<8x128xf32>
    %2 = tpu.matmul %0, %1, %cst {dimension_numbers = #tpu.dot_dimension_numbers<[1], [0], [0], [1], [0, 0, 1, 1], [], []>} : vector<8x128xf32>, vector<128x128xf32>, vector<8x128xf32> -> vector<8x128xf32>
    %c0_3 = arith.constant 0 : index
    %c0_4 = arith.constant 0 : index
    %3 = vector.load %arg3[%c0_3, %c0_4] : memref<8x128xf32, #tpu.memory_space<vmem>>, vector<1x128xf32>
    %4 = vector.broadcast %3 : vector<1x128xf32> to vector<8x128xf32>
    %5 = arith.addf %2, %4 : vector<8x128xf32>
    %cst_5 = arith.constant 0.000000e+00 : f32
    %6 = vector.broadcast %cst_5 : f32 to vector<8x128xf32>
    %7 = arith.maximumf %5, %6 : vector<8x128xf32>
    %c1 = arith.constant 1 : index
    %c0_6 = arith.constant 0 : index
    %8 = vector.load %arg3[%c1, %c0_6] : memref<8x128xf32, #tpu.memory_space<vmem>>, vector<1x128xf32>
    %9 = vector.broadcast %8 : vector<1x128xf32> to vector<8x128xf32>
    %10 = arith.mulf %7, %9 : vector<8x128xf32>
    %c2 = arith.constant 2 : index
    %c0_7 = arith.constant 0 : index
    %11 = vector.load %arg3[%c2, %c0_7] : memref<8x128xf32, #tpu.memory_space<vmem>>, vector<1x128xf32>
    %12 = vector.broadcast %11 : vector<1x128xf32> to vector<8x128xf32>
    %13 = arith.addf %10, %12 : vector<8x128xf32>
    %14 = arith.addf %13, %0 : vector<8x128xf32>
    %c0_8 = arith.constant 0 : index
    %c0_9 = arith.constant 0 : index
    %15 = vector.load %arg4[%c0_8, %c0_9] : memref<8x128xf32, #tpu.memory_space<vmem>>, vector<8x128xf32>
    tpu.vector_store %arg4[%c0_8, %c0_9], %14 {strides = array<i32>} : memref<8x128xf32, #tpu.memory_space<vmem>>, vector<8x128xf32>,
    return
  }
  func.func @transform_0(%arg0: i32) -> (i32, i32) {
    %c0_i32 = arith.constant 0 : i32
    %c0_i32_0 = arith.constant 0 : i32
    return %arg0, %c0_i32 : i32, i32
  }
  func.func @transform_1(%arg0: i32) -> (i32, i32) {
    %c0_i32 = arith.constant 0 : i32
    %c0_i32_0 = arith.constant 0 : i32
    %c0_i32_1 = arith.constant 0 : i32
    return %c0_i32, %c0_i32_0 : i32, i32
  }
  func.func @transform_2(%arg0: i32) -> (i32, i32) {
    %c0_i32 = arith.constant 0 : i32
    %c0_i32_0 = arith.constant 0 : i32
    %c0_i32_1 = arith.constant 0 : i32
    return %c0_i32, %c0_i32_0 : i32, i32
  }
  func.func @transform_3(%arg0: i32) -> (i32, i32) {
    %c0_i32 = arith.constant 0 : i32
    %c0_i32_0 = arith.constant 0 : i32
    return %arg0, %c0_i32 : i32, i32
  }
}

</mosaic_0001>

<bundles_post_ra>
// kernel: tpu_custom_call.1
= control target key start
LH: loop header
LB: loop body
LE: loop exit
PB: predicated region body
PF: predicated region fallthrough
CT: control target
= control target key end

     0   :  { %8 = vsyncpa [#allocation3], 0  ;;  %s273_s0 = inlined_call_operand.hbm [shape: f32[8,128], index: 0, kind: input, shape index: {}]   ;;  %s274_s1 = inlined_call_operand.hbm [shape: f32[128,128], index: 1, kind: input, shape index: {}]   ;;  %s275_s2 = inlined_call_operand.hbm [shape: f32[8,128], index: 2, kind: input, shape index: {}]   ;;  %s276_s3 = inlined_call_operand.hbm [shape: f32[8,128], index: 3, kind: output, shape index: {}]  }
   0x1   :  { %9 = vsyncpa [#allocation6], 0  ;;  %s26_s14 = sshll.u32 %s274_s1, 4  ;;  %s27_s14 = int_to_ptr.hbm [resolvable:$true] %s26_s14 }
   0x2   :  { %10 = vsyncpa [#allocation4], 0  ;;  %s235_s15 = smov [#allocation5]   ;;  %s16_s19 = sshll.u32 %s273_s0, 4  ;;  %s17_s19 = int_to_ptr.hbm [resolvable:$true] %s16_s19 }
   0x3   :  { %s28_s16 = sshll.u32 %s235_s15, 4  ;;  %s236_s20 = smov 128   ;;  %s29_s16 = int_to_ptr.vmem [resolvable:$true] %s28_s16 }
   0x4   :  { %s237_s21 = smov 8   ;;  %s238_s22 = smov [#allocation2]  }
   0x5   :  { %34 = dma.hbm_to_vmem [thread:$0]  %s27_s14, 2048, %s29_s16, [#allocation6], %s236_s20, %s236_s20, %s237_s21  }
   0x6   :  { %s18_s23 = sshll.u32 %s238_s22, 4  ;;  %s40_s26 = sshll.u32 %s275_s2, 4  ;;  %s19_s23 = int_to_ptr.vmem [resolvable:$true] %s18_s23  ;;  %s41_s26 = int_to_ptr.hbm [resolvable:$true] %s40_s26 }
   0x7   :  { %21 = dma.hbm_to_vmem [thread:$0]  %s17_s19, 128, %s19_s23, [#allocation3]  }
   0x8   :  { %s239_s1 = smov [#allocation7]  }
   0x9   :  { %s42_s27 = sshll.u32 %s239_s1, 4  ;;  %s43_s27 = int_to_ptr.vmem [resolvable:$true] %s42_s27 }
   0xa   :  { %45 = dma.hbm_to_vmem [thread:$0]  %s41_s26, 128, %s43_s27, [#allocation6]  }
   0xb   :  { %229 = dma.done.wait [#allocation3], 128  }
   0xc   :  { %230 = vsyncadd [#allocation3], 4294967168 }
   0xd   :  { %231 = dma.done.wait [#allocation6], 2176  }
   0xe   :  { %232 = vsyncadd [#allocation6], 4294965120  ;;  %v74_v0 = vld [vmem:[#allocation5 + $0x78] sm:$0xff]  ;;  %v73_v1 = vld [vmem:[#allocation5 + $0x70] sm:$0xff]  ;;  %s240_s0 = smov [#allocation8]   ;;  %s113_s30 = sshll.u32 %s276_s3, 4  ;;  %s114_s30 = int_to_ptr.hbm [resolvable:$true] %s113_s30 }
   0xf   :  { %77 = vmatpush.msra.mxu0 %v74_v0  ;;  %v72_v2 = vld [vmem:[#allocation5 + $0x68] sm:$0xff]  ;;  %v71_v3 = vld [vmem:[#allocation5 + $0x60] sm:$0xff]  ;;  %v70_v4 = vld [vmem:[#allocation5 + $0x58] sm:$0xff]  ;;  %s111_s2 = sshll.u32 %s240_s0, 4  ;;  %s112_s2 = int_to_ptr.vmem [resolvable:$true] %s111_s2 }
  0x10   :  { %v69_v5 = vld [vmem:[#allocation5 + $0x50] sm:$0xff]  ;;  %v68_v6 = vld [vmem:[#allocation5 + $0x48] sm:$0xff]  ;;  %v67_v7 = vld [vmem:[#allocation5 + $0x40] sm:$0xff] }
  0x11   :  { %78 = vmatpush.msra.mxu0 %v73_v1  ;;  %v66_v8 = vld [vmem:[#allocation5 + $0x38] sm:$0xff]  ;;  %v65_v9 = vld [vmem:[#allocation5 + $0x30] sm:$0xff]  ;;  %v64_v10 = vld [vmem:[#allocation5 + $0x28] sm:$0xff] }
  0x12   :  { %v63_v11 = vld [vmem:[#allocation5 + $0x20] sm:$0xff]  ;;  %v62_v12 = vld [vmem:[#allocation5 + $0x18] sm:$0xff]  ;;  %v61_v13 = vld [vmem:[#allocation5 + $0x10] sm:$0xff] }
  0x13   :  { %79 = vmatpush.msra.mxu0 %v72_v2  ;;  %v60_v14 = vld [vmem:[#allocation5 + $0x8] sm:$0xff]  ;;  %v59_v15 = vld [vmem:[#allocation5] sm:$0xff]  ;;  %v58_v16 = vld [vmem:[#allocation2] sm:$0xff] }
  0x14   :  { %v130_v17 = vld [vmem:[#allocation7] ss:$0 sm:$0xff]  ;;  %v131_v20 = vld [vmem:[#allocation7 + $0x1] ss:$0 sm:$0xff]  ;;  %v132_v22 = vld [vmem:[#allocation7 + $0x2] ss:$0 sm:$0xff] }
  0x15   :  { %80 = vmatpush.msra.mxu0 %v71_v3 }
  0x17   :  { %81 = vmatpush.msra.mxu0 %v70_v4 }
  0x19   :  { %82 = vmatpush.msra.mxu0 %v69_v5 }
  0x1b   :  { %83 = vmatpush.msra.mxu0 %v68_v6 }
  0x1d   :  { %84 = vmatpush.msra.mxu0 %v67_v7 }
  0x1f   :  { %85 = vmatpush.msra.mxu0 %v66_v8 }
  0x21   :  { %86 = vmatpush.msra.mxu0 %v65_v9 }
  0x23   :  { %87 = vmatpush.msra.mxu0 %v64_v10 }
  0x25   :  { %88 = vmatpush.msra.mxu0 %v63_v11 }
  0x27   :  { %89 = vmatpush.msra.mxu0 %v62_v12 }
  0x29   :  { %90 = vmatpush.msra.mxu0 %v61_v13 }
  0x2b   :  { %91 = vmatpush.msra.mxu0 %v60_v14 }
  0x2d   :  { %92 = vmatpush.msra.mxu0 %v59_v15 }
  0x2e   :  { %93 = vmatmul.f32.vlgmr.msra.gmra.mxu0 %v58_v16 }
  0xab   :  { %v94_v18 = vpop.f32.mrf.mxu0 }
  0xac   :  { %v95_v19 = vadd.f32 %v130_v17, %v94_v18 }
  0xae   :  { %v97_v21 = vmax.f32 %v95_v19, 0.0 }
  0xb0   :  { %v100_v23 = vmul.f32 %v131_v20, %v97_v21 }
  0xb2   :  { %v103_v24 = vadd.f32 %v132_v22, %v100_v23 }
  0xb4   :  { %v104_v25 = vadd.f32 %v103_v24, %v58_v16 }
  0xb6   :  { %105 = vst [vmem:[#allocation8] sm:$0xff] %v104_v25 }
  0xb7   :  { %116 = dma.vmem_to_hbm [thread:$0]  %s112_s2, 128, %s114_s30, [#allocation4]  }
  0xb8   :  { %233 = dma.done.wait [#allocation4], 128  }
  0xb9   :  { %234 = vsyncadd [#allocation4], 4294967168 }
  0xba   :  { %121 = vsyncpa [#allocation3], 1 }
  0xbb   :  { %122 = vsyncpa [#allocation6], 1 }
  0xbc   :  { %123 = vsyncpa [#allocation4], 1 }

</bundles_post_ra>
